<compile_context>
chip_gen: v5e
topology: v5e:2x2
jax: 0.10.0
libtpu: 0.0.40
codegen_flags: <defaults>
</compile_context>

<pallas_src>
from functools import partial

import jax
import jax.numpy as jnp
from jax.experimental import pallas as pl
from jax.experimental.pallas import tpu as pltpu


# --------------------------------------------------------------------------- #
# Pass 1: one-shot sampling / bookkeeping (tiny arrays, no grid).
# --------------------------------------------------------------------------- #
def _sample_kernel(s_ref, u_ref, a_ref, pi_ref, r_ref):
    p = jax.nn.sigmoid(s_ref[...])                       # (1, C), broadcasts
    u = u_ref[...]                                       # (N, C) uniform [0,1)
    A = (u < p).astype(jnp.float32)                      # Bernoulli(p) in {0,1}
    a_ref[...] = A
    pi_ref[...] = jnp.where(A > 0.5, p, 1.0 - p)         # (N, C)
    r_ref[...] = jnp.sum(1.0 - A, axis=1, keepdims=True)  # (N, 1)


# --------------------------------------------------------------------------- #
# Pass 2: gridded mask-multiply. One load, one multiply, one store per tile.
# --------------------------------------------------------------------------- #
def _mask_kernel(a_ref, i_ref, o_ref):
    o_ref[...] = i_ref[...] * a_ref[...]                  # (rows, cols) * (rows, 1)


@partial(jax.jit, static_argnames=())
def agent_forward(S, I, key):
    """S: (C,) parameter, I: (N, C, H, W) input, key: jax PRNG key."""
    N, C, H, W = I.shape
    HW = H * W
    NC = N * C

    S2 = S.reshape(1, C).astype(jnp.float32)
    u = jax.random.uniform(key, (N, C), dtype=jnp.float32)

    # ---- Pass 1: p, A, Pi, R (whole tiny arrays as single blocks) ----------
    A, Pi, R = pl.pallas_call(
        _sample_kernel,
        out_shape=(
            jax.ShapeDtypeStruct((N, C), jnp.float32),   # A
            jax.ShapeDtypeStruct((N, C), jnp.float32),   # Pi
            jax.ShapeDtypeStruct((N, 1), jnp.float32),   # R (keepdims)
        ),
    )(S2, u)

    # ---- Pass 2: tiled masking over I viewed as (N*C, H*W) ------------------
    I2 = I.reshape(NC, HW)                    # keep input dtype; sublane-dense
    A2 = A.reshape(NC, 1).astype(I.dtype)     # per-row channel mask (tiny)

    itemsize = jnp.dtype(I.dtype).itemsize
    target_bytes = 2 * 1024 * 1024            # ~2 MiB per block

    # Column block: lane-dense multiple of 128 (or full extent), capped.
    if HW % 128 == 0:
        cols_budget = max(128, ((target_bytes // (8 * itemsize)) // 128) * 128)
        block_cols = min(HW, cols_budget)
    else:
        block_cols = HW                       # full extent satisfies tiling rules

    # Row block: multiple of 8 sublanes (or full extent), sized by the budget.
    rows_budget = max(1, target_bytes // (block_cols * itemsize))
    if NC % 8 == 0:
        block_rows = min(NC, max(8, (rows_budget // 8) * 8))
    else:
        block_rows = NC                       # full extent satisfies tiling rules

    grid = (pl.cdiv(NC, block_rows), pl.cdiv(HW, block_cols))

    out2 = pl.pallas_call(
        _mask_kernel,
        out_shape=jax.ShapeDtypeStruct((NC, HW), I.dtype),
        grid=grid,
        in_specs=[
            pl.BlockSpec((block_rows, 1), lambda r, c: (r, 0)),          # mask
            pl.BlockSpec((block_rows, block_cols), lambda r, c: (r, c)),  # input
        ],
        out_specs=pl.BlockSpec((block_rows, block_cols), lambda r, c: (r, c)),
        compiler_params=pltpu.CompilerParams(
            dimension_semantics=("parallel", "parallel"),  # megacore on v7x
            vmem_limit_bytes=32 * 1024 * 1024,
        ),
    )(A2, I2)

    return out2.reshape(N, C, H, W), A, Pi, R.reshape(N)


if __name__ == "__main__":
    # Small shapes consistent with the forward pass: batch=2, channels=4, 16x16.
    N, C, H, W = 2, 4, 16, 16
    key = jax.random.PRNGKey(0)
    k_inp, k_bern = jax.random.split(key)
    I = jax.random.normal(k_inp, (N, C, H, W), dtype=jnp.float32)
    # Deterministic parameter init, as in Agent.__init__: S = ones(C) * 9.6
    S = jnp.ones((C,), dtype=jnp.float32) * 9.6

    out, A, Pi, R = agent_forward(S, I, k_bern)
    jax.block_until_ready((out, A, Pi, R))

    # Self-consistency checks against the module's semantics.
    p = jax.nn.sigmoid(jnp.broadcast_to(S[None, :], (N, C)))
    assert bool(jnp.all((A == 0.0) | (A == 1.0))), "A must be a 0/1 mask"
    assert jnp.allclose(out, I * A[:, :, None, None], atol=1e-6), "masking mismatch"
    assert jnp.allclose(Pi, jnp.where(A == 1.0, p, 1.0 - p), atol=1e-6), "Pi mismatch"
    assert jnp.allclose(R, jnp.sum(1.0 - A, axis=1), atol=1e-6), "R mismatch"

    print("KERNEL_OK")
</pallas_src>

<mosaic_0001>
module attributes {stable_mosaic.version = 11 : i64} {
  func.func @_sample_kernel(%arg0: memref<1x4xf32, #tpu.memory_space<vmem>>, %arg1: memref<2x4xf32, #tpu.memory_space<vmem>>, %arg2: memref<2x4xf32, #tpu.memory_space<vmem>>, %arg3: memref<2x4xf32, #tpu.memory_space<vmem>>, %arg4: memref<2x1xf32, #tpu.memory_space<vmem>>) attributes {dimension_semantics = [], scalar_prefetch = 0 : i64, scratch_operands = 0 : i64, tpu.core_type = #tpu.core_type<tc>} {
    %c0 = arith.constant 0 : index
    %c0_0 = arith.constant 0 : index
    %0 = vector.load %arg0[%c0, %c0_0] : memref<1x4xf32, #tpu.memory_space<vmem>>, vector<1x4xf32>
    %1 = arith.negf %0 : vector<1x4xf32>
    %2 = math.exp %1 : vector<1x4xf32>
    %cst = arith.constant 1.000000e+00 : f32
    %3 = vector.broadcast %cst : f32 to vector<1x4xf32>
    %4 = arith.addf %3, %2 : vector<1x4xf32>
    %5 = arith.divf %3, %4 : vector<1x4xf32>
    %c0_1 = arith.constant 0 : index
    %c0_2 = arith.constant 0 : index
    %6 = vector.load %arg1[%c0_1, %c0_2] : memref<2x4xf32, #tpu.memory_space<vmem>>, vector<2x4xf32>
    %7 = vector.broadcast %5 : vector<1x4xf32> to vector<2x4xf32>
    %8 = arith.cmpf olt, %6, %7 : vector<2x4xf32>
    %9 = arith.extui %8 : vector<2x4xi1> to vector<2x4xi32>
    %10 = arith.sitofp %9 : vector<2x4xi32> to vector<2x4xf32>
    %c0_3 = arith.constant 0 : index
    %c0_4 = arith.constant 0 : index
    %11 = vector.load %arg2[%c0_3, %c0_4] : memref<2x4xf32, #tpu.memory_space<vmem>>, vector<2x4xf32>
    tpu.vector_store %arg2[%c0_3, %c0_4], %10 {strides = array<i32>} : memref<2x4xf32, #tpu.memory_space<vmem>>, vector<2x4xf32>,
    %cst_5 = arith.constant 5.000000e-01 : f32
    %12 = vector.broadcast %cst_5 : f32 to vector<2x4xf32>
    %13 = arith.cmpf ogt, %10, %12 : vector<2x4xf32>
    %cst_6 = arith.constant 1.000000e+00 : f32
    %14 = vector.broadcast %cst_6 : f32 to vector<1x4xf32>
    %15 = arith.subf %14, %5 : vector<1x4xf32>
    %16 = vector.shape_cast %5 : vector<1x4xf32> to vector<1x4xf32>
    %17 = vector.broadcast %16 : vector<1x4xf32> to vector<2x4xf32>
    %18 = vector.shape_cast %15 : vector<1x4xf32> to vector<1x4xf32>
    %19 = vector.broadcast %18 : vector<1x4xf32> to vector<2x4xf32>
    %20 = arith.select %13, %17, %19 : vector<2x4xi1>, vector<2x4xf32>
    %c0_7 = arith.constant 0 : index
    %c0_8 = arith.constant 0 : index
    %21 = vector.load %arg3[%c0_7, %c0_8] : memref<2x4xf32, #tpu.memory_space<vmem>>, vector<2x4xf32>
    tpu.vector_store %arg3[%c0_7, %c0_8], %20 {strides = array<i32>} : memref<2x4xf32, #tpu.memory_space<vmem>>, vector<2x4xf32>,
    %cst_9 = arith.constant 1.000000e+00 : f32
    %22 = vector.broadcast %cst_9 : f32 to vector<2x4xf32>
    %23 = arith.subf %22, %10 : vector<2x4xf32>
    %cst_10 = arith.constant dense<0.000000e+00> : vector<2xf32>
    %24 = vector.multi_reduction <add>, %23, %cst_10 [1] : vector<2x4xf32> to vector<2xf32>
    %25 = vector.shape_cast %24 : vector<2xf32> to vector<2x1xf32>
    %c0_11 = arith.constant 0 : index
    %c0_12 = arith.constant 0 : index
    %26 = vector.load %arg4[%c0_11, %c0_12] : memref<2x1xf32, #tpu.memory_space<vmem>>, vector<2x1xf32>
    tpu.vector_store %arg4[%c0_11, %c0_12], %25 {strides = array<i32>} : memref<2x1xf32, #tpu.memory_space<vmem>>, vector<2x1xf32>,
    return
  }
}

module attributes {stable_mosaic.version = 11 : i64} {
  func.func @_mask_kernel(%arg0: i32, %arg1: i32, %arg2: memref<8x1xf32, #tpu.memory_space<vmem>>, %arg3: memref<8x256xf32, #tpu.memory_space<vmem>>, %arg4: memref<8x256xf32, #tpu.memory_space<vmem>>) attributes {dimension_semantics = [#tpu.dimension_semantics<parallel>, #tpu.dimension_semantics<parallel>], iteration_bounds = array<i64: 1, 1>, scalar_prefetch = 0 : i64, scratch_operands = 0 : i64, tpu.core_type = #tpu.core_type<tc>, window_params = [{transform_indices = @transform_0, window_bounds = array<i64: 8, 1>}, {transform_indices = @transform_1, window_bounds = array<i64: 8, 256>}, {transform_indices = @transform_2, window_bounds = array<i64: 8, 256>}]} {
    %c0 = arith.constant 0 : index
    %c0_0 = arith.constant 0 : index
    %0 = vector.load %arg3[%c0, %c0_0] : memref<8x256xf32, #tpu.memory_space<vmem>>, vector<8x256xf32>
    %c0_1 = arith.constant 0 : index
    %c0_2 = arith.constant 0 : index
    %1 = vector.load %arg2[%c0_1, %c0_2] : memref<8x1xf32, #tpu.memory_space<vmem>>, vector<8x1xf32>
    %2 = vector.broadcast %1 : vector<8x1xf32> to vector<8x256xf32>
    %3 = arith.mulf %0, %2 : vector<8x256xf32>
    %c0_3 = arith.constant 0 : index
    %c0_4 = arith.constant 0 : index
    %4 = vector.load %arg4[%c0_3, %c0_4] : memref<8x256xf32, #tpu.memory_space<vmem>>, vector<8x256xf32>
    tpu.vector_store %arg4[%c0_3, %c0_4], %3 {strides = array<i32>} : memref<8x256xf32, #tpu.memory_space<vmem>>, vector<8x256xf32>,
    return
  }
  func.func @transform_0(%arg0: i32, %arg1: i32) -> (i32, i32) {
    %c0_i32 = arith.constant 0 : i32
    %c0_i32_0 = arith.constant 0 : i32
    return %arg0, %c0_i32 : i32, i32
  }
  func.func @transform_1(%arg0: i32, %arg1: i32) -> (i32, i32) {
    %c0_i32 = arith.constant 0 : i32
    return %arg0, %arg1 : i32, i32
  }
  func.func @transform_2(%arg0: i32, %arg1: i32) -> (i32, i32) {
    %c0_i32 = arith.constant 0 : i32
    return %arg0, %arg1 : i32, i32
  }
}

</mosaic_0001>

<bundles_post_ra>
// kernel: agent_forward.3
= control target key start
LH: loop header
LB: loop body
LE: loop exit
PB: predicated region body
PF: predicated region fallthrough
CT: control target
= control target key end

     0   :  { %v29_v0 = vmov 0   ;;  %s60_s0 = inlined_call_operand.vmem [shape: f32[8,1], index: 0, kind: input, shape index: {}]   ;;  %s61_s1 = inlined_call_operand.vmem [shape: f32[8,256], index: 1, kind: input, shape index: {}]   ;;  %s62_s2 = inlined_call_operand.vmem [shape: f32[8,256], index: 2, kind: output, shape index: {}]  }
   0x1   :  { %28 = vset.pattern.permute.xlu0 %v29_v0  ;;  %v13_v1 = vld [vmem:[%s60_s0] sm:$0xff]  ;;  %v12_v3 = vld [vmem:[%s61_s1 + $0x8] sm:$0xff] }
   0x2   :  { %16 = vperm.xlu0 %28, %v13_v1   ;;  %v11_v2 = vld [vmem:[%s61_s1] sm:$0xff] }
  0x74   :  { %v17_v4 = vpop.permute.xlu0 %16 }
  0x75   :  { %v19_v5 = vmul.f32 %v17_v4, %v11_v2  ;;  %v20_v6 = vmul.f32 %v17_v4, %v12_v3 }
  0x77   :  { %21 = vst [vmem:[%s62_s2] sm:$0xff] %v19_v5 }
  0x78   :  { %22 = vst [vmem:[%s62_s2 + $0x8] sm:$0xff] %v20_v6 }

// kernel: agent_forward.2
= control target key start
LH: loop header
LB: loop body
LE: loop exit
PB: predicated region body
PF: predicated region fallthrough
CT: control target
= control target key end

     0   :  { %s157_s0 = inlined_call_operand.vmem [shape: f32[1,4], index: 0, kind: input, shape index: {}]   ;;  %s158_s1 = inlined_call_operand.vmem [shape: f32[2,4], index: 1, kind: input, shape index: {}]   ;;  %s159_s2 = inlined_call_operand.vmem [shape: f32[2,4], index: 2, kind: output, shape index: {0}]   ;;  %s160_s3 = inlined_call_operand.hbm [shape: f32[2,4], index: 3, kind: output, shape index: {1}]   ;;  %s161_s4 = inlined_call_operand.vmem [shape: f32[2,1], index: 4, kind: output, shape index: {2}]  }
   0x1   :  { %v15_v0 = vld [vmem:[%s157_s0] sm:$0x1] }
   0x2   :  { %v81_v1 = vmul.f32 -1.442695, %v15_v0 }
   0x3   :  { %10 = vsyncpa [#allocation3], 0  ;;  %v35_v14 = vld [vmem:[%s158_s1] sm:$0x3]  ;;  %v115_v16 = vmov 0.0   ;;  %vm42_vm5 = vcmask 25600  }
   0x4   :  { %85 = vpow2.f32 %v81_v1  ;;  %s116_s20 = smov [#allocation2]   ;;  %s66_s24 = sshll.u32 %s160_s3, 4  ;;  %vm55_vm7 = vcmask 1024   ;;  %s67_s24 = int_to_ptr.hbm [resolvable:$true] %s66_s24 }
   0x5   :  { %s64_s21 = sshll.u32 %s116_s20, 4  ;;  %s65_s21 = int_to_ptr.vmem [resolvable:$true] %s64_s21 }
   0xa   :  { %v86_v2 = vpop.eup %85 }
   0xb   :  { %v19_v3 = vadd.f32 1.0, %v86_v2 }
   0xd   :  { %87 = vrcp.f32 %v19_v3  ;;  %v31_v6 = vand.u32 2147483648, %v19_v3  ;;  %vm25_vm0 = vweird.f32 %v19_v3  ;;  %v29_v8 = vand.u32 2147483647, %v19_v3 }
   0xf   :  { %v32_v10 = vor.u32 1.1754944e-38, %v31_v6  ;;  %vm30_vm3 = vcmp.eq.f32.partialorder %v29_v8, 8.507059e+37 }
  0x13   :  { %v88_v4 = vpop.eup %87 }
  0x14   :  { %v21_v5 = vmul.f32 %v88_v4, %v19_v3  ;;  %vm26_vm1 = vweird.f32 %v88_v4 }
  0x15   :  { %vm27_vm2 = vmor %vm25_vm0, %vm26_vm1 }
  0x16   :  { %v22_v7 = vsub.f32 1.0, %v21_v5 }
  0x18   :  { %v23_v9 = vmul.f32 %v88_v4, %v22_v7 }
  0x1a   :  { %v24_v11 = vadd.f32 %v88_v4, %v23_v9 }
  0x1c   :  { %v28_v12 = vsel %vm27_vm2, %v88_v4, %v24_v11 }
  0x1d   :  { %v33_v13 = vsel %vm30_vm3, %v32_v10, %v28_v12 }
  0x1e   :  { %v37_v15 = vperm.slane %v33_v13, 0  ;;  %v45_v20 = vsub.f32 1.0, %v33_v13 }
  0x20   :  { %vm39_vm4 = vcmp.lt.f32.partialorder %v35_v14, %v37_v15  ;;  %v47_v21 = vperm.slane %v45_v20, 0 }
  0x21   :  { %v82_v17 = vsel %vm39_vm4, 1.0, %v115_v16 }
  0x22   :  { %43 = vst.msk [vmem:[%s159_s2] sm:$0x3] %vm42_vm5, %v82_v17  ;;  %v51_v18 = vsub.f32 1.0, %v82_v17  ;;  %vm44_vm6 = vcmp.gt.f32.partialorder %v82_v17, 0.5 }
  0x23   :  { %v49_v22 = vsel %vm44_vm6, %v37_v15, %v47_v21 }
  0x24   :  { %v52_v19 = vsel %vm42_vm5, %v51_v18, 0.0  ;;  %50 = vst.msk [vmem:[#allocation2] sm:$0x3] %vm42_vm5, %v49_v22 }
  0x25   :  { %53 = vadd.xlane.f32.xlu0 %v52_v19  ;;  %69 = dma.vmem_to_hbm [thread:$0]  %s65_s21, 32, %s67_s24, [#allocation3]  }
  0x98   :  { %v54_v23 = vpop.xlane.xlu0 %53 }
  0x99   :  { %56 = vst.msk [vmem:[%s161_s4] sm:$0x3] %vm55_vm7, %v54_v23 }
  0x9a   :  { %113 = dma.done.wait [#allocation3], 32  }
  0x9b   :  { %114 = vsyncadd [#allocation3], 4294967264 }
  0x9c   :  { %80 = vsyncpa [#allocation3], 1 }

</bundles_post_ra>
